<compile_context>
chip_gen: v5e
topology: v5e:2x2
jax: 0.10.0
libtpu: 0.0.40
codegen_flags: <defaults>
</compile_context>

<pallas_src>
import functools

import jax
import jax.numpy as jnp
from jax.experimental import pallas as pl
from jax.experimental.pallas import tpu as pltpu

IN_DIM = 2
HID = 128
OUT_DIM = 4
OUT_W = 8                # narrow padded output width (32 B/row in f32)
DEFAULT_BLOCK_B = 2048   # batch tile; sweepable, well inside scoped VMEM everywhere


def _round_up(n, m):
    return ((n + m - 1) // m) * m


def _device_defaults():
    """Per-generation tuning: (elementwise dtype, minimum grid steps)."""
    try:
        kind = jax.devices()[0].device_kind.lower()
    except Exception:
        kind = ""
    # v5e has no bf16 VPU -> keep bias-add/ReLU in f32 there; bf16 elsewhere.
    is_v5e = ("v5e" in kind) or ("v5 lite" in kind) or ("v5litepod" in kind)
    ew_dtype = jnp.float32 if is_v5e else jnp.bfloat16
    # v7x has 2 TensorCores per chip -> keep >= 2 grid steps when batch allows.
    min_steps = 2 if "v7" in kind else 1
    return ew_dtype, min_steps


def qnet_kernel(x_ref, w1_ref, w2_ref, w3_ref, w4_ref, b123_ref, b4_ref, o_ref,
                *, ew_dtype):
    b1 = b123_ref[0:1, :]   # (1, 128) in ew_dtype
    b2 = b123_ref[1:2, :]
    b3 = b123_ref[2:3, :]

    # fc1 + relu : (TB, 2) @ (2, 128), bf16 operands, f32 accumulation.
    x = x_ref[...].astype(jnp.bfloat16)
    h = jnp.dot(x, w1_ref[...], preferred_element_type=jnp.float32)
    h = jnp.maximum(h.astype(ew_dtype) + b1, 0.0).astype(jnp.bfloat16)
    # fc2 + relu
    h = jnp.dot(h, w2_ref[...], preferred_element_type=jnp.float32)
    h = jnp.maximum(h.astype(ew_dtype) + b2, 0.0).astype(jnp.bfloat16)
    # fc3 + relu
    h = jnp.dot(h, w3_ref[...], preferred_element_type=jnp.float32)
    h = jnp.maximum(h.astype(ew_dtype) + b3, 0.0).astype(jnp.bfloat16)
    # fc4 (no activation): (TB, 128) @ (128, 8) -> narrow f32 output block.
    o = jnp.dot(h, w4_ref[...], preferred_element_type=jnp.float32)
    o_ref[...] = o + b4_ref[...]


def prepare_params(params, *, elementwise_dtype=jnp.bfloat16):
    """One-time cast / narrow padding of the weights; stack the hidden biases.

    Done at init / param-update time, never inside the jitted forward.
    """
    (w1, b1), (w2, b2), (w3, b3), (w4, b4) = params
    w1_p = w1.astype(jnp.bfloat16)                                      # (2, 128)
    w2_p = w2.astype(jnp.bfloat16)                                      # (128, 128)
    w3_p = w3.astype(jnp.bfloat16)                                      # (128, 128)
    w4_p = (jnp.zeros((HID, OUT_W), jnp.float32)
            .at[:, :OUT_DIM].set(w4)).astype(jnp.bfloat16)              # (128, 8)
    b123 = (jnp.zeros((8, HID), jnp.float32)
            .at[0].set(b1).at[1].set(b2).at[2].set(b3)
            ).astype(elementwise_dtype)                                 # (8, 128)
    b4_p = jnp.zeros((1, OUT_W), jnp.float32).at[0, :OUT_DIM].set(b4)   # (1, 8)
    return (w1_p, w2_p, w3_p, w4_p, b123, b4_p)


@functools.partial(jax.jit, static_argnames=("block_b", "min_grid_steps"))
def qnetwork_forward(x, padded_params, *, block_b=DEFAULT_BLOCK_B, min_grid_steps=1):
    """x: (B, 2) float32 -> (B, 4) float32."""
    w1_p, w2_p, w3_p, w4_p, b123, b4_p = padded_params
    B = x.shape[0]

    # Batch tile: sublane-aligned, at most block_b rows. Pallas handles the
    # (possibly partial) boundary block, so no host-side row padding is needed.
    TB = min(block_b, _round_up(B, 8))
    if min_grid_steps > 1 and B > 8 * min_grid_steps:
        # v7x: keep >= min_grid_steps grid steps so both TensorCores get work.
        TB = min(TB, _round_up(-(-B // min_grid_steps), 8))
    grid = (pl.cdiv(B, TB),)

    const = lambda shape: pl.BlockSpec(shape, lambda i: (0, 0))
    kernel = functools.partial(qnet_kernel, ew_dtype=b123.dtype)

    out = pl.pallas_call(
        kernel,
        out_shape=jax.ShapeDtypeStruct((B, OUT_W), jnp.float32),
        grid_spec=pltpu.PrefetchScalarGridSpec(
            num_scalar_prefetch=0,
            grid=grid,
            in_specs=[
                pl.BlockSpec((TB, IN_DIM), lambda i: (i, 0)),  # x tile (8 B/row)
                const((IN_DIM, HID)),                          # w1 (VMEM-resident)
                const((HID, HID)),                             # w2
                const((HID, HID)),                             # w3
                const((HID, OUT_W)),                           # w4 (narrow)
                const((8, HID)),                               # stacked b1..b3
                const((1, OUT_W)),                             # b4
            ],
            out_specs=pl.BlockSpec((TB, OUT_W), lambda i: (i, 0)),
        ),
        compiler_params=pltpu.CompilerParams(
            dimension_semantics=("parallel",),
        ),
    )(x, w1_p, w2_p, w3_p, w4_p, b123, b4_p)

    return out[:, :OUT_DIM]


def init_params(key):
    """PyTorch-style Linear init: U(-1/sqrt(fan_in), 1/sqrt(fan_in)).
    Weights stored as (in_features, out_features)."""
    dims = [(IN_DIM, HID), (HID, HID), (HID, HID), (HID, OUT_DIM)]
    params = []
    for (fan_in, fan_out) in dims:
        key, kw, kb = jax.random.split(key, 3)
        bound = 1.0 / jnp.sqrt(fan_in)
        w = jax.random.uniform(kw, (fan_in, fan_out), jnp.float32, -bound, bound)
        b = jax.random.uniform(kb, (fan_out,), jnp.float32, -bound, bound)
        params.append((w, b))
    return params


def reference_forward(x, params):
    h = x
    for i, (w, b) in enumerate(params):
        h = h @ w + b
        if i < len(params) - 1:
            h = jnp.maximum(h, 0.0)
    return h


if __name__ == "__main__":
    key = jax.random.PRNGKey(0)
    key, kx = jax.random.split(key)
    params = init_params(key)

    ew_dtype, min_steps = _device_defaults()
    padded_params = prepare_params(params, elementwise_dtype=ew_dtype)

    # Small batch (single grid step).
    BATCH = 8
    x = jax.random.normal(kx, (BATCH, IN_DIM), jnp.float32)
    out = jax.block_until_ready(
        qnetwork_forward(x, padded_params, min_grid_steps=min_steps))
    ref = reference_forward(x, params)
    assert out.shape == (BATCH, OUT_DIM)
    # bf16 MXU operands (and bf16 elementwise on v6e/v7x) -> bf16-level tolerance.
    assert jnp.allclose(out, ref, atol=5e-2, rtol=5e-2)

    # Larger batch exercising a multi-step "parallel" grid with a smaller tile.
    key, kx2 = jax.random.split(key)
    BATCH2 = 128
    x2 = jax.random.normal(kx2, (BATCH2, IN_DIM), jnp.float32)
    out2 = jax.block_until_ready(
        qnetwork_forward(x2, padded_params, block_b=64, min_grid_steps=min_steps))
    ref2 = reference_forward(x2, params)
    assert out2.shape == (BATCH2, OUT_DIM)
    assert jnp.allclose(out2, ref2, atol=5e-2, rtol=5e-2)

    print("KERNEL_OK")
</pallas_src>

<mosaic_0001>
module attributes {stable_mosaic.version = 11 : i64} {
  func.func @qnet_kernel(%arg0: i32, %arg1: memref<8x2xf32, #tpu.memory_space<vmem>>, %arg2: memref<2x128xbf16, #tpu.memory_space<vmem>>, %arg3: memref<128x128xbf16, #tpu.memory_space<vmem>>, %arg4: memref<128x128xbf16, #tpu.memory_space<vmem>>, %arg5: memref<128x8xbf16, #tpu.memory_space<vmem>>, %arg6: memref<8x128xbf16, #tpu.memory_space<vmem>>, %arg7: memref<1x8xf32, #tpu.memory_space<vmem>>, %arg8: memref<8x8xf32, #tpu.memory_space<vmem>>) attributes {dimension_semantics = [#tpu.dimension_semantics<parallel>], iteration_bounds = array<i64: 1>, scalar_prefetch = 0 : i64, scratch_operands = 0 : i64, tpu.core_type = #tpu.core_type<tc>, window_params = [{transform_indices = @transform_0, window_bounds = array<i64: 8, 2>}, {pipeline_mode = #tpu.pipeline_mode<synchronous>, transform_indices = @transform_1, window_bounds = array<i64: 2, 128>}, {pipeline_mode = #tpu.pipeline_mode<synchronous>, transform_indices = @transform_2, window_bounds = array<i64: 128, 128>}, {pipeline_mode = #tpu.pipeline_mode<synchronous>, transform_indices = @transform_3, window_bounds = array<i64: 128, 128>}, {pipeline_mode = #tpu.pipeline_mode<synchronous>, transform_indices = @transform_4, window_bounds = array<i64: 128, 8>}, {pipeline_mode = #tpu.pipeline_mode<synchronous>, transform_indices = @transform_5, window_bounds = array<i64: 8, 128>}, {pipeline_mode = #tpu.pipeline_mode<synchronous>, transform_indices = @transform_6, window_bounds = array<i64: 1, 8>}, {transform_indices = @transform_7, window_bounds = array<i64: 8, 8>}]} {
    %c0 = arith.constant 0 : index
    %c0_0 = arith.constant 0 : index
    %0 = vector.load %arg6[%c0, %c0_0] : memref<8x128xbf16, #tpu.memory_space<vmem>>, vector<1x128xbf16>
    %c1 = arith.constant 1 : index
    %c0_1 = arith.constant 0 : index
    %1 = vector.load %arg6[%c1, %c0_1] : memref<8x128xbf16, #tpu.memory_space<vmem>>, vector<1x128xbf16>
    %c2 = arith.constant 2 : index
    %c0_2 = arith.constant 0 : index
    %2 = vector.load %arg6[%c2, %c0_2] : memref<8x128xbf16, #tpu.memory_space<vmem>>, vector<1x128xbf16>
    %c0_3 = arith.constant 0 : index
    %c0_4 = arith.constant 0 : index
    %3 = vector.load %arg1[%c0_3, %c0_4] : memref<8x2xf32, #tpu.memory_space<vmem>>, vector<8x2xf32>
    %4 = arith.truncf %3 : vector<8x2xf32> to vector<8x2xbf16>
    %c0_5 = arith.constant 0 : index
    %c0_6 = arith.constant 0 : index
    %5 = vector.load %arg2[%c0_5, %c0_6] : memref<2x128xbf16, #tpu.memory_space<vmem>>, vector<2x128xbf16>
    %cst = arith.constant dense<0.000000e+00> : vector<8x128xf32>
    %6 = tpu.matmul %4, %5, %cst {dimension_numbers = #tpu.dot_dimension_numbers<[1], [0], [0], [1], [0, 0, 1, 1], [], []>} : vector<8x2xbf16>, vector<2x128xbf16>, vector<8x128xf32> -> vector<8x128xf32>
    %7 = arith.truncf %6 : vector<8x128xf32> to vector<8x128xbf16>
    %8 = vector.broadcast %0 : vector<1x128xbf16> to vector<8x128xbf16>
    %9 = arith.addf %7, %8 : vector<8x128xbf16>
    %cst_7 = arith.constant 0.000000e+00 : bf16
    %10 = vector.broadcast %cst_7 : bf16 to vector<8x128xbf16>
    %11 = arith.maximumf %9, %10 : vector<8x128xbf16>
    %c0_8 = arith.constant 0 : index
    %c0_9 = arith.constant 0 : index
    %12 = vector.load %arg3[%c0_8, %c0_9] : memref<128x128xbf16, #tpu.memory_space<vmem>>, vector<128x128xbf16>
    %cst_10 = arith.constant dense<0.000000e+00> : vector<8x128xf32>
    %13 = tpu.matmul %11, %12, %cst_10 {dimension_numbers = #tpu.dot_dimension_numbers<[1], [0], [0], [1], [0, 0, 1, 1], [], []>} : vector<8x128xbf16>, vector<128x128xbf16>, vector<8x128xf32> -> vector<8x128xf32>
    %14 = arith.truncf %13 : vector<8x128xf32> to vector<8x128xbf16>
    %15 = vector.broadcast %1 : vector<1x128xbf16> to vector<8x128xbf16>
    %16 = arith.addf %14, %15 : vector<8x128xbf16>
    %cst_11 = arith.constant 0.000000e+00 : bf16
    %17 = vector.broadcast %cst_11 : bf16 to vector<8x128xbf16>
    %18 = arith.maximumf %16, %17 : vector<8x128xbf16>
    %c0_12 = arith.constant 0 : index
    %c0_13 = arith.constant 0 : index
    %19 = vector.load %arg4[%c0_12, %c0_13] : memref<128x128xbf16, #tpu.memory_space<vmem>>, vector<128x128xbf16>
    %cst_14 = arith.constant dense<0.000000e+00> : vector<8x128xf32>
    %20 = tpu.matmul %18, %19, %cst_14 {dimension_numbers = #tpu.dot_dimension_numbers<[1], [0], [0], [1], [0, 0, 1, 1], [], []>} : vector<8x128xbf16>, vector<128x128xbf16>, vector<8x128xf32> -> vector<8x128xf32>
    %21 = arith.truncf %20 : vector<8x128xf32> to vector<8x128xbf16>
    %22 = vector.broadcast %2 : vector<1x128xbf16> to vector<8x128xbf16>
    %23 = arith.addf %21, %22 : vector<8x128xbf16>
    %cst_15 = arith.constant 0.000000e+00 : bf16
    %24 = vector.broadcast %cst_15 : bf16 to vector<8x128xbf16>
    %25 = arith.maximumf %23, %24 : vector<8x128xbf16>
    %c0_16 = arith.constant 0 : index
    %c0_17 = arith.constant 0 : index
    %26 = vector.load %arg5[%c0_16, %c0_17] : memref<128x8xbf16, #tpu.memory_space<vmem>>, vector<128x8xbf16>
    %cst_18 = arith.constant dense<0.000000e+00> : vector<8x8xf32>
    %27 = tpu.matmul %25, %26, %cst_18 {dimension_numbers = #tpu.dot_dimension_numbers<[1], [0], [0], [1], [0, 0, 1, 1], [], []>} : vector<8x128xbf16>, vector<128x8xbf16>, vector<8x8xf32> -> vector<8x8xf32>
    %c0_19 = arith.constant 0 : index
    %c0_20 = arith.constant 0 : index
    %28 = vector.load %arg7[%c0_19, %c0_20] : memref<1x8xf32, #tpu.memory_space<vmem>>, vector<1x8xf32>
    %29 = vector.broadcast %28 : vector<1x8xf32> to vector<8x8xf32>
    %30 = arith.addf %27, %29 : vector<8x8xf32>
    %c0_21 = arith.constant 0 : index
    %c0_22 = arith.constant 0 : index
    %31 = vector.load %arg8[%c0_21, %c0_22] : memref<8x8xf32, #tpu.memory_space<vmem>>, vector<8x8xf32>
    tpu.vector_store %arg8[%c0_21, %c0_22], %30 {strides = array<i32>} : memref<8x8xf32, #tpu.memory_space<vmem>>, vector<8x8xf32>,
    return
  }
  func.func @transform_0(%arg0: i32) -> (i32, i32) {
    %c0_i32 = arith.constant 0 : i32
    %c0_i32_0 = arith.constant 0 : i32
    return %arg0, %c0_i32 : i32, i32
  }
  func.func @transform_1(%arg0: i32) -> (i32, i32) {
    %c0_i32 = arith.constant 0 : i32
    %c0_i32_0 = arith.constant 0 : i32
    %c0_i32_1 = arith.constant 0 : i32
    return %c0_i32, %c0_i32_0 : i32, i32
  }
  func.func @transform_2(%arg0: i32) -> (i32, i32) {
    %c0_i32 = arith.constant 0 : i32
    %c0_i32_0 = arith.constant 0 : i32
    %c0_i32_1 = arith.constant 0 : i32
    return %c0_i32, %c0_i32_0 : i32, i32
  }
  func.func @transform_3(%arg0: i32) -> (i32, i32) {
    %c0_i32 = arith.constant 0 : i32
    %c0_i32_0 = arith.constant 0 : i32
    %c0_i32_1 = arith.constant 0 : i32
    return %c0_i32, %c0_i32_0 : i32, i32
  }
  func.func @transform_4(%arg0: i32) -> (i32, i32) {
    %c0_i32 = arith.constant 0 : i32
    %c0_i32_0 = arith.constant 0 : i32
    %c0_i32_1 = arith.constant 0 : i32
    return %c0_i32, %c0_i32_0 : i32, i32
  }
  func.func @transform_5(%arg0: i32) -> (i32, i32) {
    %c0_i32 = arith.constant 0 : i32
    %c0_i32_0 = arith.constant 0 : i32
    %c0_i32_1 = arith.constant 0 : i32
    return %c0_i32, %c0_i32_0 : i32, i32
  }
  func.func @transform_6(%arg0: i32) -> (i32, i32) {
    %c0_i32 = arith.constant 0 : i32
    %c0_i32_0 = arith.constant 0 : i32
    %c0_i32_1 = arith.constant 0 : i32
    return %c0_i32, %c0_i32_0 : i32, i32
  }
  func.func @transform_7(%arg0: i32) -> (i32, i32) {
    %c0_i32 = arith.constant 0 : i32
    %c0_i32_0 = arith.constant 0 : i32
    return %arg0, %c0_i32 : i32, i32
  }
}

</mosaic_0001>

<bundles_post_ra>
// kernel: qnetwork_forward.1
= control target key start
LH: loop header
LB: loop body
LE: loop exit
PB: predicated region body
PF: predicated region fallthrough
CT: control target
= control target key end

     0   :  { %12 = vsyncpa [#allocation3], 0  ;;  %s498_s27 = smov [#allocation2]   ;;  %s499_s29 = smov 64   ;;  %s610_s0 = inlined_call_operand.vmem [shape: f32[8,2], index: 0, kind: input, shape index: {}]   ;;  %s611_s1 = inlined_call_operand.vmem [shape: bf16[2,128], index: 1, kind: input, shape index: {}]   ;;  %s612_s2 = inlined_call_operand.vmem [shape: bf16[128,128], index: 2, kind: input, shape index: {}]   ;;  %s613_s3 = inlined_call_operand.hbm [shape: bf16[128,128], index: 3, kind: input, shape index: {}]   ;;  %s614_s4 = inlined_call_operand.vmem [shape: bf16[128,8], index: 4, kind: input, shape index: {}]   ;;  %s615_s5 = inlined_call_operand.vmem [shape: bf16[8,128], index: 5, kind: input, shape index: {}]   ;;  %s616_s6 = inlined_call_operand.vmem [shape: f32[1,8], index: 6, kind: input, shape index: {}]   ;;  %s617_s7 = inlined_call_operand.vmem [shape: f32[8,8], index: 7, kind: output, shape index: {}]  }
   0x1   :  { %s23_s26 = sshll.u32 %s613_s3, 4  ;;  %s25_s28 = sshll.u32 %s498_s27, 4  ;;  %s24_s26 = int_to_ptr.hbm [resolvable:$true] %s23_s26  ;;  %s26_s28 = int_to_ptr.vmem [resolvable:$true] %s25_s28 }
   0x2   :  { %s500_s30 = smov 4  }
   0x3   :  { %31 = dma.hbm_to_vmem [thread:$0]  %s24_s26, 1024, %s26_s28, [#allocation3], %s499_s29, %s499_s29, %s500_s30  }
   0x4   :  { %496 = dma.done.wait [#allocation3], 1024  }
   0x5   :  { %497 = vsyncadd [#allocation3], 4294966272  ;;  %vm52_vm0 = vcmask 1040384   ;;  %v47_v0 = vld [vmem:[%s611_s1] sm:$0x1]  ;;  %v451_v2 = vld [vmem:[%s612_s2 + $0x38] sm:$0xff] }
   0x6   :  { %v45_v1 = vld [vmem:[%s610_s0] sm:$0xff]  ;;  %v54_v3 = vsel %vm52_vm0, %v47_v0, 0  ;;  %vm48_vm1 = vcmask 15360   ;;  %145 = vmatpush.bf16.msra.mxu1 %v451_v2  ;;  %v450_v5 = vld [vmem:[%s612_s2 + $0x30] sm:$0xff]  ;;  %v449_v6 = vld [vmem:[%s612_s2 + $0x28] sm:$0xff]  ;;  %vm340_vm2 = vcmask 64512  }
   0x7   :  { %v46_v4 = vpack.c.bf16 %v45_v1, %v45_v1  ;;  %63 = vmatpush.bf16.msra.mxu0 %v54_v3  ;;  %v448_v7 = vld [vmem:[%s612_s2 + $0x20] sm:$0xff]  ;;  %v447_v8 = vld [vmem:[%s612_s2 + $0x18] sm:$0xff]  ;;  %v446_v9 = vld [vmem:[%s612_s2 + $0x10] sm:$0xff] }
   0x8   :  { %v445_v10 = vld [vmem:[%s612_s2 + $0x8] sm:$0xff]  ;;  %v444_v11 = vld [vmem:[%s612_s2] sm:$0xff]  ;;  %v459_v12 = vld [vmem:[#allocation2 + $0x38] sm:$0xff] }
   0x9   :  { %234 = vmatpush.bf16.msra.mxu2 %v459_v12  ;;  %v458_v13 = vld [vmem:[#allocation2 + $0x30] sm:$0xff]  ;;  %v457_v14 = vld [vmem:[#allocation2 + $0x28] sm:$0xff]  ;;  %v456_v15 = vld [vmem:[#allocation2 + $0x20] sm:$0xff] }
   0xa   :  { %347 = vmatmul.msk.bf16.vlgmr.msra.gmra.mxu0 %vm48_vm1, %v46_v4  ;;  %146 = vmatpush.bf16.msra.mxu1 %v450_v5  ;;  %v43_v16 = vld [vmem:[%s615_s5] sm:$0x1]  ;;  %v455_v18 = vld [vmem:[#allocation2 + $0x18] sm:$0xff]  ;;  %v454_v28 = vld [vmem:[#allocation2 + $0x10] sm:$0xff] }
   0xb   :  { %v71_v17 = vpack.i.b16 %v43_v16, %v43_v16  ;;  %v453_v29 = vld [vmem:[#allocation2 + $0x8] sm:$0xff]  ;;  %v452_v30 = vld [vmem:[#allocation2] sm:$0xff]  ;;  %v467_v31 = vld [vmem:[%s614_s4 + $0x38] sm:$0xff]  ;;  %v159_v34 = vshrl.u32 %v43_v16, 16 }
   0xc   :  { %327 = vmatpush.bf16.msra.mxu3 %v467_v31  ;;  %v466_v32 = vld [vmem:[%s614_s4 + $0x30] sm:$0xff]  ;;  %v465_v33 = vld [vmem:[%s614_s4 + $0x28] sm:$0xff]  ;;  %v464_v35 = vld [vmem:[%s614_s4 + $0x20] sm:$0xff] }
   0xd   :  { %235 = vmatpush.bf16.msra.mxu2 %v458_v13  ;;  %v73_v19 = vperm.slane %v71_v17, 0  ;;  %v160_v36 = vpack.i.b16 %v159_v34, %v159_v34  ;;  %v463_v37 = vld [vmem:[%s614_s4 + $0x18] sm:$0xff]  ;;  %v462_v47 = vld [vmem:[%s614_s4 + $0x10] sm:$0xff]  ;;  %v461_v48 = vld [vmem:[%s614_s4 + $0x8] sm:$0xff] }
   0xe   :  { %147 = vmatpush.bf16.msra.mxu1 %v449_v6  ;;  %v460_v49 = vld [vmem:[%s614_s4] sm:$0xff] }
   0xf   :  { %v75_v22 = vunpack.c.l.bf16 %v73_v19  ;;  %v162_v38 = vperm.slane %v160_v36, 0  ;;  %v44_v50 = vld [vmem:[%s615_s5] sm:$0x2]  ;;  %v471_v61 = vld [vmem:[%s616_s6] ss:$0 sm:$0xff] }
  0x10   :  { %328 = vmatpush.bf16.msra.mxu3 %v466_v32  ;;  %v249_v51 = vpack.i.b16 %v44_v50, %v44_v50 }
  0x11   :  { %236 = vmatpush.bf16.msra.mxu2 %v457_v14  ;;  %v164_v41 = vunpack.c.l.bf16 %v162_v38 }
  0x12   :  { %148 = vmatpush.bf16.msra.mxu1 %v448_v7  ;;  %v251_v52 = vperm.slane %v249_v51, 1 }
  0x14   :  { %329 = vmatpush.bf16.msra.mxu3 %v465_v33  ;;  %v253_v55 = vunpack.c.l.bf16 %v251_v52 }
  0x15   :  { %237 = vmatpush.bf16.msra.mxu2 %v456_v15 }
  0x16   :  { %149 = vmatpush.bf16.msra.mxu1 %v447_v8 }
  0x18   :  { %330 = vmatpush.bf16.msra.mxu3 %v464_v35 }
  0x19   :  { %238 = vmatpush.bf16.msra.mxu2 %v455_v18 }
  0x1a   :  { %150 = vmatpush.bf16.msra.mxu1 %v446_v9 }
  0x1c   :  { %331 = vmatpush.bf16.msra.mxu3 %v463_v37 }
  0x1d   :  { %239 = vmatpush.bf16.msra.mxu2 %v454_v28 }
  0x1e   :  { %151 = vmatpush.bf16.msra.mxu1 %v445_v10 }
  0x20   :  { %332 = vmatpush.bf16.msra.mxu3 %v462_v47 }
  0x21   :  { %240 = vmatpush.bf16.msra.mxu2 %v453_v29 }
  0x22   :  { %152 = vmatpush.bf16.msra.mxu1 %v444_v11 }
  0x24   :  { %333 = vmatpush.bf16.msra.mxu3 %v461_v48 }
  0x25   :  { %241 = vmatpush.bf16.msra.mxu2 %v452_v30 }
  0x28   :  { %334 = vmatpush.bf16.msra.mxu3 %v460_v49 }
  0x87   :  { %v65_v20 = vpop.f32.mrf.mxu0 }
  0x88   :  { %v69_v21 = vpack.c.bf16 %v65_v20, %v65_v20 }
  0x8a   :  { %v74_v23 = vunpack.c.l.bf16 %v69_v21 }
  0x8c   :  { %v76_v24 = vadd.f32 %v75_v22, %v74_v23 }
  0x8e   :  { %v79_v25 = vmax.f32 %v76_v24, 0.0 }
  0x8f   :  { %v67_v26 = vpop.f32.mrf.mxu0 }
  0x90   :  { %v80_v27 = vpack.c.bf16 %v79_v25, %v79_v25 }
  0x92   :  { %153 = vmatmul.bf16.vlgmr.msra.gmra.mxu1 %v80_v27 }
 0x10f   :  { %v154_v39 = vpop.f32.mrf.mxu1 }
 0x110   :  { %v158_v40 = vpack.c.bf16 %v154_v39, %v154_v39 }
 0x112   :  { %v163_v42 = vunpack.c.l.bf16 %v158_v40 }
 0x114   :  { %v165_v43 = vadd.f32 %v164_v41, %v163_v42 }
 0x116   :  { %v168_v44 = vmax.f32 %v165_v43, 0.0 }
 0x117   :  { %v156_v45 = vpop.f32.mrf.mxu1 }
 0x118   :  { %v169_v46 = vpack.c.bf16 %v168_v44, %v168_v44 }
 0x11a   :  { %242 = vmatmul.bf16.vlgmr.msra.gmra.mxu2 %v169_v46 }
 0x19d   :  { %v243_v53 = vpop.f32.mrf.mxu2 }
 0x19e   :  { %v247_v54 = vpack.c.bf16 %v243_v53, %v243_v53 }
 0x1a0   :  { %v252_v56 = vunpack.c.l.bf16 %v247_v54 }
 0x1a2   :  { %v254_v57 = vadd.f32 %v253_v55, %v252_v56 }
 0x1a4   :  { %v257_v58 = vmax.f32 %v254_v57, 0.0 }
 0x1a5   :  { %v245_v59 = vpop.f32.mrf.mxu2 }
 0x1a6   :  { %v258_v60 = vpack.c.bf16 %v257_v58, %v257_v58 }
 0x1a8   :  { %335 = vmatmul.bf16.vlgmr.msra.gmra.mxu3 %v258_v60 }
 0x22b   :  { %v336_v62 = vpop.f32.mrf.mxu3 }
 0x22c   :  { %v337_v63 = vadd.f32 %v471_v61, %v336_v62 }
 0x22e   :  { %341 = vst.msk [vmem:[%s617_s7] sm:$0xff] %vm340_vm2, %v337_v63 }
 0x233   :  { %v338_v0 = vpop.f32.mrf.mxu3 }
 0x234   :  { %346 = vsyncpa [#allocation3], 1 }

</bundles_post_ra>
